<compile_context>
chip_gen: v6e
topology: v6e:2x2x1
jax: 0.10.0
libtpu: 0.0.40
codegen_flags: <defaults>
</compile_context>

<pallas_src>
import functools

import jax
import jax.numpy as jnp
from jax.experimental import pallas as pl
from jax.experimental.pallas import tpu as pltpu


INPUT_DIM = 310
HIDDEN_DIM = 512
OUT_DIM = 128


def _round_up(x, m):
    return (x + m - 1) // m * m


def _num_tensorcores_per_chip():
    """Best-effort: 2 TensorCores on v7x-class chips, 1 otherwise."""
    try:
        kind = jax.devices()[0].device_kind.lower()
    except Exception:
        return 1
    return 2 if ("v7" in kind or "7x" in kind) else 1


def _choose_bm(batch, bm_max, n_cores):
    """Pick the batch tile (static, trace-time decision)."""
    if n_cores > 1 and batch >= 256:
        # Guarantee >= n_cores grid steps so every TensorCore gets work.
        per_core = _round_up(-(-batch // n_cores), 16)
        return max(16, min(bm_max, per_core))
    if batch <= bm_max:
        # Single fat grid step; block == full batch so any B is legal.
        return batch
    return bm_max


def feature_extractor_kernel(x_ref, w1_ref, b1_ref, w2_ref, b2_ref,
                             w3_ref, b3_ref, o_ref):
    # Layer 1: relu(x @ W1 + b1).  The f32 -> bf16 cast of x is fused here
    # (VPU), and the dot runs at K=310 against the unpadded bf16 W1; the MXU
    # accumulates in f32.
    x = x_ref[...].astype(w1_ref.dtype)
    h = jnp.dot(x, w1_ref[...], preferred_element_type=jnp.float32)
    h = jnp.maximum(h + b1_ref[...], 0.0)
    # Layer 2: relu(h @ W2 + b2)
    h = jnp.dot(h.astype(w2_ref.dtype), w2_ref[...],
                preferred_element_type=jnp.float32)
    h = jnp.maximum(h + b2_ref[...], 0.0)
    # Layer 3: relu(h @ W3 + b3)
    h = jnp.dot(h.astype(w3_ref.dtype), w3_ref[...],
                preferred_element_type=jnp.float32)
    h = jnp.maximum(h + b3_ref[...], 0.0)
    o_ref[...] = h.astype(o_ref.dtype)


@functools.partial(jax.jit, static_argnames=("bm", "out_dtype"))
def _forward(x, w1, b1, w2, b2, w3, b3, *, bm, out_dtype):
    B = x.shape[0]
    grid = (pl.cdiv(B, bm),)

    in_specs = [
        # x tile: f32, last dim is the full 310 features (no padding needed).
        pl.BlockSpec((bm, INPUT_DIM), lambda i: (i, 0)),
        # Weights / biases: constant index_maps -> stay resident across steps.
        pl.BlockSpec((INPUT_DIM, HIDDEN_DIM), lambda i: (0, 0)),
        pl.BlockSpec((1, HIDDEN_DIM), lambda i: (0, 0)),
        pl.BlockSpec((HIDDEN_DIM, HIDDEN_DIM), lambda i: (0, 0)),
        pl.BlockSpec((1, HIDDEN_DIM), lambda i: (0, 0)),
        pl.BlockSpec((HIDDEN_DIM, OUT_DIM), lambda i: (0, 0)),
        pl.BlockSpec((1, OUT_DIM), lambda i: (0, 0)),
    ]
    out_specs = pl.BlockSpec((bm, OUT_DIM), lambda i: (i, 0))

    return pl.pallas_call(
        feature_extractor_kernel,
        out_shape=jax.ShapeDtypeStruct((B, OUT_DIM), out_dtype),
        grid_spec=pltpu.PrefetchScalarGridSpec(
            num_scalar_prefetch=0,
            grid=grid,
            in_specs=in_specs,
            out_specs=out_specs,
        ),
        compiler_params=pltpu.CompilerParams(
            dimension_semantics=("parallel",),
            vmem_limit_bytes=32 * 1024 * 1024,
        ),
    )(x, w1, b1, w2, b2, w3, b3)


def pack_params(params):
    """One-time parameter packing: bf16 weights (MXU-native), f32 biases (1, N)."""
    return {
        "w1": params["w1"].astype(jnp.bfloat16),
        "w2": params["w2"].astype(jnp.bfloat16),
        "w3": params["w3"].astype(jnp.bfloat16),
        "b1": params["b1"].reshape(1, -1).astype(jnp.float32),
        "b2": params["b2"].reshape(1, -1).astype(jnp.float32),
        "b3": params["b3"].reshape(1, -1).astype(jnp.float32),
    }


def feature_extractor(x, packed, *, bm=512, out_dtype=jnp.float32):
    """x: (B, 310) float32. packed: output of pack_params. Returns (B, 128)."""
    B, D = x.shape
    assert D == INPUT_DIM
    bm_eff = _choose_bm(B, bm, _num_tensorcores_per_chip())
    return _forward(x, packed["w1"], packed["b1"], packed["w2"], packed["b2"],
                    packed["w3"], packed["b3"], bm=bm_eff, out_dtype=out_dtype)


def init_params(key):
    """Deterministic synthetic init (matches PyTorch Linear shapes, transposed)."""
    k1, k2, k3, k4, k5, k6 = jax.random.split(key, 6)

    def lin(kw, kb, fan_in, fan_out):
        bound = 1.0 / jnp.sqrt(fan_in)
        w = jax.random.uniform(kw, (fan_in, fan_out), jnp.float32, -bound, bound)
        b = jax.random.uniform(kb, (1, fan_out), jnp.float32, -bound, bound)
        return w, b

    w1, b1 = lin(k1, k2, INPUT_DIM, HIDDEN_DIM)
    w2, b2 = lin(k3, k4, HIDDEN_DIM, HIDDEN_DIM)
    w3, b3 = lin(k5, k6, HIDDEN_DIM, OUT_DIM)
    return {"w1": w1, "b1": b1, "w2": w2, "b2": b2, "w3": w3, "b3": b3}


def reference_forward_f32(x, p):
    h = jnp.maximum(x @ p["w1"] + p["b1"], 0.0)
    h = jnp.maximum(h @ p["w2"] + p["b2"], 0.0)
    h = jnp.maximum(h @ p["w3"] + p["b3"], 0.0)
    return h


def reference_forward_bf16(x, p):
    # Mirrors the kernel's numerics: bf16 operands, f32 accumulation/epilogue.
    bf = jnp.bfloat16
    h = jnp.dot(x.astype(bf), p["w1"].astype(bf),
                preferred_element_type=jnp.float32) + p["b1"]
    h = jnp.maximum(h, 0.0)
    h = jnp.dot(h.astype(bf), p["w2"].astype(bf),
                preferred_element_type=jnp.float32) + p["b2"]
    h = jnp.maximum(h, 0.0)
    h = jnp.dot(h.astype(bf), p["w3"].astype(bf),
                preferred_element_type=jnp.float32) + p["b3"]
    h = jnp.maximum(h, 0.0)
    return h


if __name__ == "__main__":
    key = jax.random.PRNGKey(0)
    kx1, kx2, kp = jax.random.split(key, 3)
    params = init_params(kp)
    packed = pack_params(params)

    # Case 1: small batch -> single fat grid step (block == full batch).
    batch1 = 16
    x1 = jax.random.normal(kx1, (batch1, INPUT_DIM), dtype=jnp.float32)
    out1 = jax.block_until_ready(feature_extractor(x1, packed))
    assert out1.shape == (batch1, OUT_DIM)
    ref1_bf16 = reference_forward_bf16(x1, params)
    ref1_f32 = reference_forward_f32(x1, params)
    assert jnp.allclose(out1, ref1_bf16, atol=1e-2, rtol=1e-2), "mismatch vs bf16 ref"
    assert jnp.allclose(out1, ref1_f32, atol=6e-2, rtol=6e-2), "mismatch vs f32 ref"

    # Case 2: ragged batch with a forced small tile -> multi-step "parallel"
    # grid with a masked partial last block (300 = 2*128 + 44).
    batch2 = 300
    x2 = jax.random.normal(kx2, (batch2, INPUT_DIM), dtype=jnp.float32)
    out2 = jax.block_until_ready(feature_extractor(x2, packed, bm=128))
    assert out2.shape == (batch2, OUT_DIM)
    ref2_bf16 = reference_forward_bf16(x2, params)
    ref2_f32 = reference_forward_f32(x2, params)
    assert jnp.allclose(out2, ref2_bf16, atol=1e-2, rtol=1e-2), "mismatch vs bf16 ref (tiled)"
    assert jnp.allclose(out2, ref2_f32, atol=6e-2, rtol=6e-2), "mismatch vs f32 ref (tiled)"

    print("KERNEL_OK")
</pallas_src>

<mosaic_0001>
module attributes {stable_mosaic.version = 11 : i64} {
  func.func @feature_extractor_kernel(%arg0: i32, %arg1: memref<16x310xf32, #tpu.memory_space<vmem>>, %arg2: memref<310x512xbf16, #tpu.memory_space<vmem>>, %arg3: memref<1x512xf32, #tpu.memory_space<vmem>>, %arg4: memref<512x512xbf16, #tpu.memory_space<vmem>>, %arg5: memref<1x512xf32, #tpu.memory_space<vmem>>, %arg6: memref<512x128xbf16, #tpu.memory_space<vmem>>, %arg7: memref<1x128xf32, #tpu.memory_space<vmem>>, %arg8: memref<16x128xf32, #tpu.memory_space<vmem>>) attributes {dimension_semantics = [#tpu.dimension_semantics<parallel>], iteration_bounds = array<i64: 1>, scalar_prefetch = 0 : i64, scratch_operands = 0 : i64, tpu.core_type = #tpu.core_type<tc>, window_params = [{transform_indices = @transform_0, window_bounds = array<i64: 16, 310>}, {pipeline_mode = #tpu.pipeline_mode<synchronous>, transform_indices = @transform_1, window_bounds = array<i64: 310, 512>}, {pipeline_mode = #tpu.pipeline_mode<synchronous>, transform_indices = @transform_2, window_bounds = array<i64: 1, 512>}, {pipeline_mode = #tpu.pipeline_mode<synchronous>, transform_indices = @transform_3, window_bounds = array<i64: 512, 512>}, {pipeline_mode = #tpu.pipeline_mode<synchronous>, transform_indices = @transform_4, window_bounds = array<i64: 1, 512>}, {pipeline_mode = #tpu.pipeline_mode<synchronous>, transform_indices = @transform_5, window_bounds = array<i64: 512, 128>}, {pipeline_mode = #tpu.pipeline_mode<synchronous>, transform_indices = @transform_6, window_bounds = array<i64: 1, 128>}, {transform_indices = @transform_7, window_bounds = array<i64: 16, 128>}]} {
    %c0 = arith.constant 0 : index
    %c0_0 = arith.constant 0 : index
    %0 = vector.load %arg1[%c0, %c0_0] : memref<16x310xf32, #tpu.memory_space<vmem>>, vector<16x310xf32>
    %1 = arith.truncf %0 : vector<16x310xf32> to vector<16x310xbf16>
    %c0_1 = arith.constant 0 : index
    %c0_2 = arith.constant 0 : index
    %2 = vector.load %arg2[%c0_1, %c0_2] : memref<310x512xbf16, #tpu.memory_space<vmem>>, vector<310x512xbf16>
    %cst = arith.constant dense<0.000000e+00> : vector<16x512xf32>
    %3 = tpu.matmul %1, %2, %cst {dimension_numbers = #tpu.dot_dimension_numbers<[1], [0], [0], [1], [0, 0, 1, 1], [], []>} : vector<16x310xbf16>, vector<310x512xbf16>, vector<16x512xf32> -> vector<16x512xf32>
    %c0_3 = arith.constant 0 : index
    %c0_4 = arith.constant 0 : index
    %4 = vector.load %arg3[%c0_3, %c0_4] : memref<1x512xf32, #tpu.memory_space<vmem>>, vector<1x512xf32>
    %5 = vector.broadcast %4 : vector<1x512xf32> to vector<16x512xf32>
    %6 = arith.addf %3, %5 : vector<16x512xf32>
    %cst_5 = arith.constant 0.000000e+00 : f32
    %7 = vector.broadcast %cst_5 : f32 to vector<16x512xf32>
    %8 = arith.maximumf %6, %7 : vector<16x512xf32>
    %9 = arith.truncf %8 : vector<16x512xf32> to vector<16x512xbf16>
    %c0_6 = arith.constant 0 : index
    %c0_7 = arith.constant 0 : index
    %10 = vector.load %arg4[%c0_6, %c0_7] : memref<512x512xbf16, #tpu.memory_space<vmem>>, vector<512x512xbf16>
    %cst_8 = arith.constant dense<0.000000e+00> : vector<16x512xf32>
    %11 = tpu.matmul %9, %10, %cst_8 {dimension_numbers = #tpu.dot_dimension_numbers<[1], [0], [0], [1], [0, 0, 1, 1], [], []>} : vector<16x512xbf16>, vector<512x512xbf16>, vector<16x512xf32> -> vector<16x512xf32>
    %c0_9 = arith.constant 0 : index
    %c0_10 = arith.constant 0 : index
    %12 = vector.load %arg5[%c0_9, %c0_10] : memref<1x512xf32, #tpu.memory_space<vmem>>, vector<1x512xf32>
    %13 = vector.broadcast %12 : vector<1x512xf32> to vector<16x512xf32>
    %14 = arith.addf %11, %13 : vector<16x512xf32>
    %cst_11 = arith.constant 0.000000e+00 : f32
    %15 = vector.broadcast %cst_11 : f32 to vector<16x512xf32>
    %16 = arith.maximumf %14, %15 : vector<16x512xf32>
    %17 = arith.truncf %16 : vector<16x512xf32> to vector<16x512xbf16>
    %c0_12 = arith.constant 0 : index
    %c0_13 = arith.constant 0 : index
    %18 = vector.load %arg6[%c0_12, %c0_13] : memref<512x128xbf16, #tpu.memory_space<vmem>>, vector<512x128xbf16>
    %cst_14 = arith.constant dense<0.000000e+00> : vector<16x128xf32>
    %19 = tpu.matmul %17, %18, %cst_14 {dimension_numbers = #tpu.dot_dimension_numbers<[1], [0], [0], [1], [0, 0, 1, 1], [], []>} : vector<16x512xbf16>, vector<512x128xbf16>, vector<16x128xf32> -> vector<16x128xf32>
    %c0_15 = arith.constant 0 : index
    %c0_16 = arith.constant 0 : index
    %20 = vector.load %arg7[%c0_15, %c0_16] : memref<1x128xf32, #tpu.memory_space<vmem>>, vector<1x128xf32>
    %21 = vector.broadcast %20 : vector<1x128xf32> to vector<16x128xf32>
    %22 = arith.addf %19, %21 : vector<16x128xf32>
    %cst_17 = arith.constant 0.000000e+00 : f32
    %23 = vector.broadcast %cst_17 : f32 to vector<16x128xf32>
    %24 = arith.maximumf %22, %23 : vector<16x128xf32>
    %c0_18 = arith.constant 0 : index
    %c0_19 = arith.constant 0 : index
    %25 = vector.load %arg8[%c0_18, %c0_19] : memref<16x128xf32, #tpu.memory_space<vmem>>, vector<16x128xf32>
    tpu.vector_store %arg8[%c0_18, %c0_19], %24 {strides = array<i32>} : memref<16x128xf32, #tpu.memory_space<vmem>>, vector<16x128xf32>,
    return
  }
  func.func @transform_0(%arg0: i32) -> (i32, i32) {
    %c0_i32 = arith.constant 0 : i32
    %c0_i32_0 = arith.constant 0 : i32
    return %arg0, %c0_i32 : i32, i32
  }
  func.func @transform_1(%arg0: i32) -> (i32, i32) {
    %c0_i32 = arith.constant 0 : i32
    %c0_i32_0 = arith.constant 0 : i32
    %c0_i32_1 = arith.constant 0 : i32
    return %c0_i32, %c0_i32_0 : i32, i32
  }
  func.func @transform_2(%arg0: i32) -> (i32, i32) {
    %c0_i32 = arith.constant 0 : i32
    %c0_i32_0 = arith.constant 0 : i32
    %c0_i32_1 = arith.constant 0 : i32
    return %c0_i32, %c0_i32_0 : i32, i32
  }
  func.func @transform_3(%arg0: i32) -> (i32, i32) {
    %c0_i32 = arith.constant 0 : i32
    %c0_i32_0 = arith.constant 0 : i32
    %c0_i32_1 = arith.constant 0 : i32
    return %c0_i32, %c0_i32_0 : i32, i32
  }
  func.func @transform_4(%arg0: i32) -> (i32, i32) {
    %c0_i32 = arith.constant 0 : i32
    %c0_i32_0 = arith.constant 0 : i32
    %c0_i32_1 = arith.constant 0 : i32
    return %c0_i32, %c0_i32_0 : i32, i32
  }
  func.func @transform_5(%arg0: i32) -> (i32, i32) {
    %c0_i32 = arith.constant 0 : i32
    %c0_i32_0 = arith.constant 0 : i32
    %c0_i32_1 = arith.constant 0 : i32
    return %c0_i32, %c0_i32_0 : i32, i32
  }
  func.func @transform_6(%arg0: i32) -> (i32, i32) {
    %c0_i32 = arith.constant 0 : i32
    %c0_i32_0 = arith.constant 0 : i32
    %c0_i32_1 = arith.constant 0 : i32
    return %c0_i32, %c0_i32_0 : i32, i32
  }
  func.func @transform_7(%arg0: i32) -> (i32, i32) {
    %c0_i32 = arith.constant 0 : i32
    %c0_i32_0 = arith.constant 0 : i32
    return %arg0, %c0_i32 : i32, i32
  }
}

</mosaic_0001>

<bundles_post_ra>
// kernel: _forward.1
= control target key start
LH: loop header
LB: loop body
LE: loop exit
PB: predicated region body
PF: predicated region fallthrough
CT: control target
= control target key end

     0   :  { %12 = vsyncpa [#allocation3], 0  ;;  %s3031_s0 = inlined_call_operand.hbm [shape: f32[16,310], index: 0, kind: input, shape index: {}]   ;;  %s3032_s1 = inlined_call_operand.hbm [shape: bf16[310,512], index: 1, kind: input, shape index: {}]   ;;  %s3033_s2 = inlined_call_operand.hbm [shape: f32[1,512], index: 2, kind: input, shape index: {}]   ;;  %s3034_s3 = inlined_call_operand.hbm [shape: bf16[512,512], index: 3, kind: input, shape index: {}]   ;;  %s3035_s4 = inlined_call_operand.vmem [shape: f32[1,512], index: 4, kind: input, shape index: {}]   ;;  %s3036_s5 = inlined_call_operand.hbm [shape: bf16[512,128], index: 5, kind: input, shape index: {}]   ;;  %s3037_s6 = inlined_call_operand.vmem [shape: f32[1,128], index: 6, kind: input, shape index: {}]   ;;  %s3038_s7 = inlined_call_operand.hbm [shape: f32[16,128], index: 7, kind: output, shape index: {}]  }
   0x1   :  { %13 = vsyncpa [#allocation6], 0 }
   0x2   :  { %14 = vsyncpa [#allocation9], 0 }
   0x3   :  { %15 = vsyncpa [#allocation4], 0  ;;  %s2910_s24 = smov [#allocation5]  }
   0x4   :  { %s33_s25 = sshll.u32 %s2910_s24, 4  ;;  %s34_s25 = int_to_ptr.vmem [resolvable:$true] %s33_s25 }
   0x5   :  { %s2790_s26 = scalar_lea.vmem %s34_s25, 9984  ;;  %p2795_p1 = scmp.lt.s32.totalorder %s34_s25, %s34_s25 }
   0x6   :  { %p2791_p0 = scmp.ne.s32.totalorder %s34_s25, %s2790_s26  ;;  %p2796_p2 = scmp.lt.s32.totalorder %s2790_s26, %s2790_s26 }
   0x8   :  { %p2797_p3 = por %p2796_p2, %p2795_p1 }
   0xa   :  { %p2798_p4 = pnand %p2797_p3, %p2791_p0 }
   0xc   :  { %2801 = shalt.err (!%p2798_p4)
}
   0xd   :  { %s2911_s27 = smov 256   ;;  %s2912_s28 = smov 16  }
   0xe   :  { %39 = dma.hbm_to_vmem [thread:$0]  %s3032_s1, 9984, %s34_s25, [#allocation6], %s2911_s27, %s2911_s27, %s2912_s28  }
   0xf   :  { %s2913_s8 = smov [#allocation8]   ;;  %s2914_s10 = smov [#allocation2]  }
  0x10   :  { %s55_s9 = sshll.u32 %s2913_s8, 4  ;;  %s21_s11 = sshll.u32 %s2914_s10, 4  ;;  %s56_s9 = int_to_ptr.vmem [resolvable:$true] %s55_s9  ;;  %s22_s11 = int_to_ptr.vmem [resolvable:$true] %s21_s11 }
  0x11   :  { %s2810_s12 = scalar_lea.vmem %s56_s9, 16384  ;;  %p2815_p6 = scmp.lt.s32.totalorder %s56_s9, %s56_s9 }
  0x12   :  { %p2811_p5 = scmp.ne.s32.totalorder %s56_s9, %s2810_s12  ;;  %p2816_p7 = scmp.lt.s32.totalorder %s2810_s12, %s2810_s12 }
  0x14   :  { %p2817_p8 = por %p2816_p7, %p2815_p6 }
  0x16   :  { %p2818_p9 = pnand %p2817_p8, %p2811_p5 }
  0x18   :  { %2821 = shalt.err (!%p2818_p9)
}
  0x19   :  { %61 = dma.hbm_to_vmem [thread:$0]  %s3034_s3, 16384, %s56_s9, [#allocation9], %s2911_s27, %s2911_s27, %s2912_s28  }
  0x1a   :  { %s2830_s15 = scalar_lea.vmem %s22_s11, 768  ;;  %p2835_p11 = scmp.lt.s32.totalorder %s22_s11, %s22_s11 }
  0x1b   :  { %p2831_p10 = scmp.ne.s32.totalorder %s22_s11, %s2830_s15  ;;  %p2836_p12 = scmp.lt.s32.totalorder %s2830_s15, %s2830_s15 }
  0x1d   :  { %p2837_p13 = por %p2836_p12, %p2835_p11 }
  0x1f   :  { %p2838_p0 = pnand %p2837_p13, %p2831_p10 }
  0x21   :  { %2841 = shalt.err (!%p2838_p0)
}
  0x22   :  { %s2915_s1 = smov 384   ;;  %s2916_s16 = smov 24  }
  0x23   :  { %27 = dma.hbm_to_vmem [thread:$0]  %s3031_s0, 768, %s22_s11, [#allocation3], %s2915_s1, %s2915_s1, %s2916_s16  }
  0x24   :  { %s2917_s19 = smov [#allocation7]   ;;  %s2918_s21 = smov [#allocation10]  }
  0x25   :  { %s46_s20 = sshll.u32 %s2917_s19, 4  ;;  %s69_s22 = sshll.u32 %s2918_s21, 4  ;;  %s47_s20 = int_to_ptr.vmem [resolvable:$true] %s46_s20  ;;  %s70_s22 = int_to_ptr.vmem [resolvable:$true] %s69_s22 }
  0x26   :  { %s2850_s3 = scalar_lea.vmem %s47_s20, 64  ;;  %p2855_p2 = scmp.lt.s32.totalorder %s47_s20, %s47_s20 }
  0x27   :  { %p2851_p1 = scmp.ne.s32.totalorder %s47_s20, %s2850_s3  ;;  %p2856_p3 = scmp.lt.s32.totalorder %s2850_s3, %s2850_s3 }
  0x29   :  { %p2857_p4 = por %p2856_p3, %p2855_p2 }
  0x2b   :  { %p2858_p5 = pnand %p2857_p4, %p2851_p1 }
  0x2d   :  { %2861 = shalt.err (!%p2858_p5)
}
  0x2e   :  { %49 = dma.hbm_to_vmem [thread:$0]  %s3033_s2, 64, %s47_s20, [#allocation6]  }
  0x2f   :  { %s2870_s25 = scalar_lea.vmem %s70_s22, 4096  ;;  %p2875_p7 = scmp.lt.s32.totalorder %s70_s22, %s70_s22 }
  0x30   :  { %p2871_p6 = scmp.ne.s32.totalorder %s70_s22, %s2870_s25  ;;  %p2876_p8 = scmp.lt.s32.totalorder %s2870_s25, %s2870_s25 }
  0x32   :  { %p2877_p9 = por %p2876_p8, %p2875_p7 }
  0x34   :  { %p2878_p10 = pnand %p2877_p9, %p2871_p6 }
  0x36   :  { %2881 = shalt.err (!%p2878_p10)
}
  0x37   :  { %s2919_s0 = smov 64   ;;  %s2920_s26 = smov 4  }
  0x38   :  { %75 = dma.hbm_to_vmem [thread:$0]  %s3036_s5, 4096, %s70_s22, [#allocation9], %s2919_s0, %s2919_s0, %s2920_s26  }
  0x39   :  { %2902 = dma.done.wait [#allocation3], 768  }
  0x3a   :  { %2903 = vsyncadd [#allocation3], 4294966528 }
  0x3b   :  { %2904 = dma.done.wait [#allocation6], 10048  }
  0x3c   :  { %2905 = vsyncadd [#allocation6], 4294957248 }
  0x3d   :  { %2906 = dma.done.wait [#allocation9], 20480  }
  0x3e   :  { %2907 = vsyncadd [#allocation9], 4294946816  ;;  %v2921_v0 = vmov 0   ;;  %v2440_v1 = vld [vmem:[#allocation5 + $0xe4] ss:$16 sps:$4 sm:$0xff]   ;;  %vm597_vm0 = vcmask 1042432  }
  0x3f   :  { %685 = vmatprep.mubr.bf16.mxu1 %v2921_v0  ;;  %v179_v2 = vld [vmem:[#allocation5 + $0x260] sm:$0x77]  ;;  %610 = vmatprep.subr.bf16.mxu0 %v2440_v1  ;;  %v99_v21 = vld [vmem:[#allocation2 + $0x28] sm:$0xff]  ;;  %vm593_vm1 = vcmask 441344   ;;  %v98_v53 = vld [vmem:[#allocation2 + $0x20] sm:$0xff]  ;;  %s2922_s30 = smov [#allocation11]  }
  0x40   :  { %v2443_v3 = vld [vmem:[#allocation5 + $0xe0] ss:$16 sps:$4 sm:$0xff]   ;;  %v2213_v4 = vcombine.high %v179_v2, %v179_v2  ;;  %v2212_v5 = vcombine.low %v179_v2, %v179_v2  ;;  %v2445_v6 = vld [vmem:[#allocation5 + $0xc4] ss:$16 sps:$4 sm:$0xff]   ;;  %v2467_v22 = vld [vmem:[#allocation5 + $0xec] ss:$16 sps:$4 sm:$0xff]  }
  0x41   :  { %611 = vmatpush1.bf16.msra.mxu0 %v2443_v3  ;;  %v2447_v7 = vld [vmem:[#allocation5 + $0x244] ss:$16 sps:$4 sm:$0xff]   ;;  %v2449_v8 = vld [vmem:[#allocation5 + $0xc0] ss:$16 sps:$4 sm:$0xff]   ;;  %v2465_v26 = vld [vmem:[#allocation5 + $0xe8] ss:$16 sps:$4 sm:$0xff]  }
  0x42   :  { %2216 = vmatprep.subr.msk.bf16.mxu1 %vm597_vm0, %v2213_v4  ;;  %v599_v9 = vsel %vm597_vm0, %v2212_v5, 0  ;;  %612 = vmatprep.subr.bf16.mxu0 %v2445_v6  ;;  %v2450_v10 = vld [vmem:[#allocation5 + $0x240] ss:$16 sps:$4 sm:$0xff]   ;;  %v2451_v11 = vld [vmem:[#allocation5 + $0xa4] ss:$16 sps:$4 sm:$0xff]   ;;  %v95_v52 = vld [vmem:[#allocation2 + $0x8] sm:$0xff] }
  0x43   :  { %662 = vmatpush1.bf16.msra.mxu1 %v599_v9  ;;  %v2453_v12 = vld [vmem:[#allocation5 + $0x224] ss:$16 sps:$4 sm:$0xff]   ;;  %v2455_v13 = vld [vmem:[#allocation5 + $0xa0] ss:$16 sps:$4 sm:$0xff]   ;;  %v2473_v27 = vld [vmem:[#allocation5 + $0xcc] ss:$16 sps:$4 sm:$0xff]   ;;  %v101_v55 = vpack.c.bf16 %v98_v53, %v95_v52 }
  0x44   :  { %663 = vmatprep.subr.bf16.mxu1 %v2447_v7  ;;  %v2457_v14 = vld [vmem:[#allocation5 + $0x84] ss:$16 sps:$4 sm:$0xff]   ;;  %v2456_v15 = vld [vmem:[#allocation5 + $0x220] ss:$16 sps:$4 sm:$0xff]   ;;  %v2471_v30 = vld [vmem:[#allocation5 + $0xc8] ss:$16 sps:$4 sm:$0xff]  }
  0x45   :  { %613 = vmatpush1.bf16.msra.mxu0 %v2449_v8  ;;  %v2459_v16 = vld [vmem:[#allocation5 + $0x204] ss:$16 sps:$4 sm:$0xff]   ;;  %v2461_v17 = vld [vmem:[#allocation5 + $0x80] ss:$16 sps:$4 sm:$0xff]   ;;  %v2479_v31 = vld [vmem:[#allocation5 + $0xac] ss:$16 sps:$4 sm:$0xff]   ;;  %642 = vmatprep.mubr.bf16.mxu0 %v101_v55 }
  0x46   :  { %614 = vmatprep.subr.bf16.mxu0 %v2451_v11  ;;  %v2462_v18 = vld [vmem:[#allocation5 + $0x200] ss:$16 sps:$4 sm:$0xff]   ;;  %v2463_v19 = vld [vmem:[#allocation5 + $0x64] ss:$16 sps:$4 sm:$0xff]   ;;  %v2477_v34 = vld [vmem:[#allocation5 + $0xa8] ss:$16 sps:$4 sm:$0xff]  }
  0x47   :  { %664 = vmatpush1.bf16.msra.mxu1 %v2450_v10  ;;  %v96_v20 = vld [vmem:[#allocation2 + $0x10] sm:$0xff]  ;;  %v2485_v35 = vld [vmem:[#allocation5 + $0x8c] ss:$16 sps:$4 sm:$0xff]   ;;  %v2483_v38 = vld [vmem:[#allocation5 + $0x88] ss:$16 sps:$4 sm:$0xff]   ;;  %s2122_s8 = sshll.u32 %s2922_s30, 4  ;;  %s2123_s8 = int_to_ptr.vmem [resolvable:$true] %s2122_s8 }
  0x48   :  { %665 = vmatprep.subr.bf16.mxu1 %v2453_v12  ;;  %v2468_v23 = vld [vmem:[#allocation5 + $0x60] ss:$16 sps:$4 sm:$0xff]   ;;  %v2983_v24 = vpack.c.bf16 %v99_v21, %v96_v20  ;;  %v2469_v25 = vld [vmem:[#allocation5 + $0x44] ss:$16 sps:$4 sm:$0xff]   ;;  %v2491_v39 = vld [vmem:[#allocation5 + $0x6c] ss:$16 sps:$4 sm:$0xff]   ;;  %p2887_p12 = scmp.lt.s32.totalorder %s2123_s8, %s2123_s8 }
  0x49   :  { %615 = vmatpush1.bf16.msra.mxu0 %v2455_v13  ;;  %v2474_v28 = vld [vmem:[#allocation5 + $0x40] ss:$16 sps:$4 sm:$0xff]   ;;  %v2475_v29 = vld [vmem:[#allocation5 + $0x24] ss:$16 sps:$4 sm:$0xff]   ;;  %v2489_v42 = vld [vmem:[#allocation5 + $0x68] ss:$16 sps:$4 sm:$0xff]  }
  0x4a   :  { %616 = vmatprep.subr.bf16.mxu0 %v2457_v14  ;;  %v2480_v32 = vld [vmem:[#allocation5 + $0x20] ss:$16 sps:$4 sm:$0xff]   ;;  %v2481_v33 = vld [vmem:[#allocation5 + $0x4] ss:$16 sps:$4 sm:$0xff]   ;;  %v2497_v43 = vld [vmem:[#allocation5 + $0x4c] ss:$16 sps:$4 sm:$0xff]  }
  0x4b   :  { %666 = vmatpush1.bf16.msra.mxu1 %v2456_v15  ;;  %v2486_v36 = vld [vmem:[#allocation5] ss:$16 sps:$4 sm:$0xff]   ;;  %v2487_v37 = vld [vmem:[#allocation5 + $0x1e4] ss:$16 sps:$4 sm:$0xff]   ;;  %v2495_v46 = vld [vmem:[#allocation5 + $0x48] ss:$16 sps:$4 sm:$0xff]  }
  0x4c   :  { %667 = vmatprep.subr.bf16.mxu1 %v2459_v16  ;;  %v2492_v40 = vld [vmem:[#allocation5 + $0x1e0] ss:$16 sps:$4 sm:$0xff]   ;;  %v2493_v41 = vld [vmem:[#allocation5 + $0x1c4] ss:$16 sps:$4 sm:$0xff]   ;;  %v2503_v47 = vld [vmem:[#allocation5 + $0x2c] ss:$16 sps:$4 sm:$0xff]  }
  0x4d   :  { %617 = vmatpush1.bf16.msra.mxu0 %v2461_v17  ;;  %v2498_v44 = vld [vmem:[#allocation5 + $0x1c0] ss:$16 sps:$4 sm:$0xff]   ;;  %v2499_v45 = vld [vmem:[#allocation5 + $0x1a4] ss:$16 sps:$4 sm:$0xff]   ;;  %v2501_v50 = vld [vmem:[#allocation5 + $0x28] ss:$16 sps:$4 sm:$0xff]  }
  0x4e   :  { %618 = vmatprep.subr.bf16.mxu0 %v2463_v19  ;;  %v2504_v48 = vld [vmem:[#allocation5 + $0x1a0] ss:$16 sps:$4 sm:$0xff]   ;;  %v2505_v49 = vld [vmem:[#allocation5 + $0x184] ss:$16 sps:$4 sm:$0xff]   ;;  %v2509_v51 = vld [vmem:[#allocation5 + $0xc] ss:$16 sps:$4 sm:$0xff]  }
  0x4f   :  { %668 = vmatpush1.bf16.msra.mxu1 %v2462_v18  ;;  %v2510_v54 = vld [vmem:[#allocation5 + $0x180] ss:$16 sps:$4 sm:$0xff]   ;;  %v2511_v56 = vld [vmem:[#allocation5 + $0x164] ss:$16 sps:$4 sm:$0xff]   ;;  %v2507_v57 = vld [vmem:[#allocation5 + $0x8] ss:$16 sps:$4 sm:$0xff]  }
  0x50   :  { %696 = vmatprep.subr.bf16.mxu1 %v2467_v22  ;;  %v2515_v58 = vld [vmem:[#allocation5 + $0x1ec] ss:$16 sps:$4 sm:$0xff]   ;;  %v2516_v59 = vld [vmem:[#allocation5 + $0x160] ss:$16 sps:$4 sm:$0xff]   ;;  %v2517_v60 = vld [vmem:[#allocation5 + $0x144] ss:$16 sps:$4 sm:$0xff]  }
  0x51   :  { %619 = vmatpush1.bf16.msra.mxu0 %v2468_v23  ;;  %v2513_v61 = vld [vmem:[#allocation5 + $0x1e8] ss:$16 sps:$4 sm:$0xff]   ;;  %v2521_v62 = vld [vmem:[#allocation5 + $0x1cc] ss:$16 sps:$4 sm:$0xff]   ;;  %v2522_v1 = vld [vmem:[#allocation5 + $0x140] ss:$16 sps:$4 sm:$0xff]  }
  0x52   :  { %2217 = vmatmul.mubr.msk.bf16.vlgmr.msra.gmra.mxu1 %vm593_vm1, %v2983_v24  ;;  %620 = vmatprep.subr.bf16.mxu0 %v2469_v25  ;;  %v2519_v63 = vld [vmem:[#allocation5 + $0x1c8] ss:$16 sps:$4 sm:$0xff]   ;;  %v2523_v2 = vld [vmem:[#allocation5 + $0x124] ss:$16 sps:$4 sm:$0xff]   ;;  %v2527_v3 = vld [vmem:[#allocation5 + $0x1ac] ss:$16 sps:$4 sm:$0xff]  }
  0x53   :  { %697 = vmatpush1.bf16.msra.mxu1 %v2465_v26  ;;  %728 = vmatprep.mubr.bf16.mxu1 %v101_v55  ;;  %v2528_v4 = vld [vmem:[#allocation5 + $0x120] ss:$16 sps:$4 sm:$0xff]   ;;  %v2529_v5 = vld [vmem:[#allocation5 + $0x104] ss:$16 sps:$4 sm:$0xff]   ;;  %v2525_v6 = vld [vmem:[#allocation5 + $0x1a8] ss:$16 sps:$4 sm:$0xff]  }
  0x54   :  { %698 = vmatprep.subr.bf16.mxu1 %v2473_v27  ;;  %v180_v7 = vld [vmem:[#allocation5 + $0x268] sm:$0x77]  ;;  %v2534_v9 = vld [vmem:[#allocation5 + $0x100] ss:$16 sps:$4 sm:$0xff]   ;;  %v2591_v52 = vld [vmem:[#allocation8 + $0x280] ss:$16 sps:$4 sm:$0xff]  }
  0x55   :  { %621 = vmatpush1.bf16.msra.mxu0 %v2474_v28  ;;  %v2533_v8 = vld [vmem:[#allocation5 + $0x18c] ss:$16 sps:$4 sm:$0xff]   ;;  %v94_v10 = vld [vmem:[#allocation2] sm:$0xff]  ;;  %v2531_v12 = vld [vmem:[#allocation5 + $0x188] ss:$16 sps:$4 sm:$0xff]   ;;  %v2215_v14 = vcombine.high %v180_v7, %v180_v7  ;;  %v2214_v15 = vcombine.low %v180_v7, %v180_v7 }
  0x56   :  { %622 = vmatprep.subr.bf16.mxu0 %v2475_v29  ;;  %v97_v11 = vld [vmem:[#allocation2 + $0x18] sm:$0xff]  ;;  %v2588_v55 = vld [vmem:[#allocation8] ss:$16 sps:$4 sm:$0xff]  }
  0x57   :  { %699 = vmatpush1.bf16.msra.mxu1 %v2471_v30  ;;  %v2537_v13 = vld [vmem:[#allocation5 + $0x16c] ss:$16 sps:$4 sm:$0xff]   ;;  %v100_v16 = vpack.c.bf16 %v97_v11, %v94_v10  ;;  %v2535_v18 = vld [vmem:[#allocation5 + $0x168] ss:$16 sps:$4 sm:$0xff]   ;;  %v605_v19 = vsel %vm597_vm0, %v2214_v15, 0 }
  0x58   :  { %700 = vmatprep.subr.bf16.mxu1 %v2479_v31  ;;  %v2545_v17 = vld [vmem:[#allocation5 + $0x24c] ss:$16 sps:$4 sm:$0xff]   ;;  %v2543_v21 = vld [vmem:[#allocation5 + $0x248] ss:$16 sps:$4 sm:$0xff]   ;;  %v2621_v7 = vld [vmem:[#allocation8 + $0x3e0] ss:$16 sps:$4 sm:$0xff]  }
  0x59   :  { %623 = vmatpush1.bf16.msra.mxu0 %v2480_v32  ;;  %v2542_v20 = vld [vmem:[#allocation5 + $0x14c] ss:$16 sps:$4 sm:$0xff]   ;;  %v2540_v23 = vld [vmem:[#allocation5 + $0x148] ss:$16 sps:$4 sm:$0xff]   ;;  %v2618_v10 = vld [vmem:[#allocation8 + $0x160] ss:$16 sps:$4 sm:$0xff]  }
  0x5a   :  { %624 = vmatprep.subr.bf16.mxu0 %v2481_v33  ;;  %v2551_v22 = vld [vmem:[#allocation5 + $0x22c] ss:$16 sps:$4 sm:$0xff]   ;;  %v2549_v26 = vld [vmem:[#allocation5 + $0x228] ss:$16 sps:$4 sm:$0xff]   ;;  %v2558_v33 = vld [vmem:[#allocation8 + $0xe0] ss:$16 sps:$4 sm:$0xff]  }
  0x5b   :  { %701 = vmatpush1.bf16.msra.mxu1 %v2477_v34  ;;  %v2548_v25 = vld [vmem:[#allocation5 + $0x12c] ss:$16 sps:$4 sm:$0xff]   ;;  %v2546_v28 = vld [vmem:[#allocation5 + $0x128] ss:$16 sps:$4 sm:$0xff]   ;;  %v2561_v34 = vld [vmem:[#allocation8 + $0xc0] ss:$16 sps:$4 sm:$0xff]  }
  0x5c   :  { %702 = vmatprep.subr.bf16.mxu1 %v2485_v35  ;;  %v2557_v27 = vld [vmem:[#allocation5 + $0x20c] ss:$16 sps:$4 sm:$0xff]   ;;  %v2555_v30 = vld [vmem:[#allocation5 + $0x208] ss:$16 sps:$4 sm:$0xff]  }
  0x5d   :  { %625 = vmatpush1.bf16.msra.mxu0 %v2486_v36  ;;  %v2554_v29 = vld [vmem:[#allocation5 + $0x10c] ss:$16 sps:$4 sm:$0xff]   ;;  %v2560_v31 = vld [vmem:[#allocation8 + $0xe4] ss:$16 sps:$4 sm:$0xff]   ;;  %v2564_v36 = vld [vmem:[#allocation8 + $0xa0] ss:$16 sps:$4 sm:$0xff]  }
  0x5e   :  { %626 = vmatprep.subr.bf16.mxu0 %v2487_v37  ;;  %v2552_v32 = vld [vmem:[#allocation5 + $0x108] ss:$16 sps:$4 sm:$0xff]  }
  0x5f   :  { %703 = vmatpush1.bf16.msra.mxu1 %v2483_v38  ;;  %v2566_v35 = vld [vmem:[#allocation8 + $0xa4] ss:$16 sps:$4 sm:$0xff]   ;;  %v2567_v38 = vld [vmem:[#allocation8 + $0x80] ss:$16 sps:$4 sm:$0xff]  }
  0x60   :  { %704 = vmatprep.subr.bf16.mxu1 %v2491_v39  ;;  %v2569_v37 = vld [vmem:[#allocation8 + $0x84] ss:$16 sps:$4 sm:$0xff]   ;;  %v2573_v39 = vld [vmem:[#allocation8 + $0x2e0] ss:$16 sps:$4 sm:$0xff]  }
  0x61   :  { %627 = vmatpush2.bf16.msra.mxu0 %v2492_v40  ;;  %v2575_v40 = vld [vmem:[#allocation8 + $0x2e4] ss:$16 sps:$4 sm:$0xff]  }
  0x62   :  { %628 = vmatprep.subr.bf16.mxu0 %v2493_v41  ;;  %v2572_v41 = vld [vmem:[#allocation8 + $0x64] ss:$16 sps:$4 sm:$0xff]  }
  0x63   :  { %705 = vmatpush1.bf16.msra.mxu1 %v2489_v42  ;;  %v2581_v42 = vld [vmem:[#allocation8 + $0x2c4] ss:$16 sps:$4 sm:$0xff]  }
  0x64   :  { %706 = vmatprep.subr.bf16.mxu1 %v2497_v43  ;;  %v2570_v43 = vld [vmem:[#allocation8 + $0x60] ss:$16 sps:$4 sm:$0xff]   ;;  %v2599_v53 = vld [vmem:[#allocation8 + $0x264] ss:$16 sps:$4 sm:$0xff]  }
  0x65   :  { %629 = vmatpush2.bf16.msra.mxu0 %v2498_v44  ;;  %v2587_v44 = vld [vmem:[#allocation8 + $0x2a4] ss:$16 sps:$4 sm:$0xff]  }
  0x66   :  { %630 = vmatprep.subr.bf16.mxu0 %v2499_v45  ;;  %v2578_v45 = vld [vmem:[#allocation8 + $0x44] ss:$16 sps:$4 sm:$0xff]  }
  0x67   :  { %707 = vmatpush1.bf16.msra.mxu1 %v2495_v46  ;;  %v2585_v46 = vld [vmem:[#allocation8 + $0x2a0] ss:$16 sps:$4 sm:$0xff]   ;;  %v2626_v11 = vld [vmem:[#allocation8 + $0x144] ss:$16 sps:$4 sm:$0xff]  }
  0x68   :  { %708 = vmatprep.subr.bf16.mxu1 %v2503_v47  ;;  %v2576_v47 = vld [vmem:[#allocation8 + $0x40] ss:$16 sps:$4 sm:$0xff]   ;;  %v2632_v15 = vld [vmem:[#allocation8 + $0x124] ss:$16 sps:$4 sm:$0xff]  }
  0x69   :  { %631 = vmatpush2.bf16.msra.mxu0 %v2504_v48  ;;  %v2593_v48 = vld [vmem:[#allocation8 + $0x284] ss:$16 sps:$4 sm:$0xff]  }
  0x6a   :  { %632 = vmatprep.subr.bf16.mxu0 %v2505_v49  ;;  %v2584_v49 = vld [vmem:[#allocation8 + $0x24] ss:$16 sps:$4 sm:$0xff]  }
  0x6b   :  { %709 = vmatpush1.bf16.msra.mxu1 %v2501_v50  ;;  %v2582_v50 = vld [vmem:[#allocation8 + $0x20] ss:$16 sps:$4 sm:$0xff]  }
  0x6c   :  { %710 = vmatprep.subr.bf16.mxu1 %v2509_v51  ;;  %v2590_v51 = vld [vmem:[#allocation8 + $0x4] ss:$16 sps:$4 sm:$0xff]  }
  0x6d   :  { %633 = vmatpush2.bf16.msra.mxu0 %v2510_v54  ;;  %v2597_v54 = vld [vmem:[#allocation8 + $0x260] ss:$16 sps:$4 sm:$0xff]  }
  0x6e   :  { %634 = vmatprep.subr.bf16.mxu0 %v2511_v56  ;;  %v2605_v56 = vld [vmem:[#allocation8 + $0x244] ss:$16 sps:$4 sm:$0xff]  }
  0x6f   :  { %711 = vmatpush1.bf16.msra.mxu1 %v2507_v57  ;;  %v2596_v57 = vld [vmem:[#allocation8 + $0x1e4] ss:$16 sps:$4 sm:$0xff]  }
  0x70   :  { %712 = vmatprep.subr.bf16.mxu1 %v2515_v58  ;;  %v2603_v58 = vld [vmem:[#allocation8 + $0x240] ss:$16 sps:$4 sm:$0xff]  }
  0x71   :  { %635 = vmatpush2.bf16.msra.mxu0 %v2516_v59  ;;  %v2594_v59 = vld [vmem:[#allocation8 + $0x1e0] ss:$16 sps:$4 sm:$0xff]  }
  0x72   :  { %636 = vmatprep.subr.bf16.mxu0 %v2517_v60  ;;  %v2611_v60 = vld [vmem:[#allocation8 + $0x224] ss:$16 sps:$4 sm:$0xff]  }
  0x73   :  { %713 = vmatpush2.bf16.msra.mxu1 %v2513_v61  ;;  %v2602_v61 = vld [vmem:[#allocation8 + $0x1c4] ss:$16 sps:$4 sm:$0xff]  }
  0x74   :  { %714 = vmatprep.subr.bf16.mxu1 %v2521_v62  ;;  %v2609_v62 = vld [vmem:[#allocation8 + $0x220] ss:$16 sps:$4 sm:$0xff]  }
  0x75   :  { %637 = vmatpush2.bf16.msra.mxu0 %v2522_v1  ;;  %v2617_v1 = vld [vmem:[#allocation8 + $0x204] ss:$16 sps:$4 sm:$0xff]  }
  0x76   :  { %638 = vmatprep.subr.bf16.mxu0 %v2523_v2  ;;  %v2608_v2 = vld [vmem:[#allocation8 + $0x1a4] ss:$16 sps:$4 sm:$0xff]  }
  0x77   :  { %715 = vmatpush2.bf16.msra.mxu1 %v2519_v63  ;;  %v2600_v63 = vld [vmem:[#allocation8 + $0x1c0] ss:$16 sps:$4 sm:$0xff]  }
  0x78   :  { %716 = vmatprep.subr.bf16.mxu1 %v2527_v3  ;;  %v2615_v3 = vld [vmem:[#allocation8 + $0x200] ss:$16 sps:$4 sm:$0xff]  }
  0x79   :  { %639 = vmatpush2.bf16.msra.mxu0 %v2528_v4  ;;  %v2606_v4 = vld [vmem:[#allocation8 + $0x1a0] ss:$16 sps:$4 sm:$0xff]  }
  0x7a   :  { %640 = vmatprep.subr.bf16.mxu0 %v2529_v5  ;;  %v2623_v5 = vld [vmem:[#allocation8 + $0x3e4] ss:$16 sps:$4 sm:$0xff]  }
  0x7b   :  { %717 = vmatpush2.bf16.msra.mxu1 %v2525_v6  ;;  %v2614_v6 = vld [vmem:[#allocation8 + $0x184] ss:$16 sps:$4 sm:$0xff]  }
  0x7c   :  { %718 = vmatprep.subr.bf16.mxu1 %v2533_v8  ;;  %v2612_v8 = vld [vmem:[#allocation8 + $0x180] ss:$16 sps:$4 sm:$0xff]  }
  0x7d   :  { %641 = vmatpush2.bf16.msra.mxu0 %v2534_v9  ;;  %v2620_v9 = vld [vmem:[#allocation8 + $0x164] ss:$16 sps:$4 sm:$0xff]  }
  0x7e   :  { %2218 = vmatprep.subr.msk.bf16.mxu0 %vm597_vm0, %v2215_v14  ;;  %v2627_v14 = vld [vmem:[#allocation8 + $0x3c0] ss:$16 sps:$4 sm:$0xff]  }
  0x7f   :  { %719 = vmatpush2.bf16.msra.mxu1 %v2531_v12  ;;  %v2624_v12 = vld [vmem:[#allocation8 + $0x140] ss:$16 sps:$4 sm:$0xff]  }
  0x80   :  { %643 = vmatmul.mubr.bf16.vlgmr.msra.gmra.mxu0 %v100_v16  ;;  %720 = vmatprep.subr.bf16.mxu1 %v2537_v13  ;;  %v2629_v13 = vld [vmem:[#allocation8 + $0x3c4] ss:$16 sps:$4 sm:$0xff]  }
  0x81   :  { %748 = vmatpush1.bf16.msra.mxu0 %v605_v19  ;;  %771 = vmatprep.mubr.bf16.mxu0 %v2921_v0  ;;  %v2563_v0 = vld [vmem:[#allocation8 + $0xc4] ss:$16 sps:$4 sm:$0xff]  }
  0x82   :  { %749 = vmatprep.subr.bf16.mxu0 %v2545_v17  ;;  %v2635_v17 = vld [vmem:[#allocation8 + $0x3a4] ss:$16 sps:$4 sm:$0xff]  }
  0x83   :  { %721 = vmatpush2.bf16.msra.mxu1 %v2535_v18  ;;  %v2633_v18 = vld [vmem:[#allocation8 + $0x3a0] ss:$16 sps:$4 sm:$0xff]   ;;  %v2638_v19 = vld [vmem:[#allocation8 + $0x104] ss:$16 sps:$4 sm:$0xff]  }
  0x84   :  { %722 = vmatprep.subr.bf16.mxu1 %v2542_v20  ;;  %v2636_v20 = vld [vmem:[#allocation8 + $0x100] ss:$16 sps:$4 sm:$0xff]  }
  0x85   :  { %750 = vmatpush1.bf16.msra.mxu0 %v2543_v21  ;;  %v2639_v21 = vld [vmem:[#allocation8 + $0x380] ss:$16 sps:$4 sm:$0xff]  }
  0x86   :  { %751 = vmatprep.subr.bf16.mxu0 %v2551_v22  ;;  %v2641_v22 = vld [vmem:[#allocation8 + $0x384] ss:$16 sps:$4 sm:$0xff]  }
  0x87   :  { %723 = vmatpush2.bf16.msra.mxu1 %v2540_v23  ;;  %v2647_v23 = vld [vmem:[#allocation8 + $0xec] ss:$16 sps:$4 sm:$0xff]  }
  0x88   :  { %724 = vmatprep.subr.bf16.mxu1 %v2548_v25  ;;  %v2642_v25 = vld [vmem:[#allocation8 + $0x360] ss:$16 sps:$4 sm:$0xff]  }
  0x89   :  { %752 = vmatpush1.bf16.msra.mxu0 %v2549_v26  ;;  %v2644_v26 = vld [vmem:[#allocation8 + $0x364] ss:$16 sps:$4 sm:$0xff]  }
  0x8a   :  { %753 = vmatprep.subr.bf16.mxu0 %v2557_v27  ;;  %v2650_v27 = vld [vmem:[#allocation8 + $0x344] ss:$16 sps:$4 sm:$0xff]  }
  0x8b   :  { %725 = vmatpush2.bf16.msra.mxu1 %v2546_v28  ;;  %v2648_v28 = vld [vmem:[#allocation8 + $0x340] ss:$16 sps:$4 sm:$0xff]  }
  0x8c   :  { %726 = vmatprep.subr.bf16.mxu1 %v2554_v29  ;;  %v2656_v29 = vld [vmem:[#allocation8 + $0x324] ss:$16 sps:$4 sm:$0xff]  }
  0x8d   :  { %754 = vmatpush1.bf16.msra.mxu0 %v2555_v30  ;;  %v2654_v30 = vld [vmem:[#allocation8 + $0x320] ss:$16 sps:$4 sm:$0xff]  }
  0x8e   :  { %1584 = vmatprep.subr.bf16.mxu0 %v2560_v31  ;;  %v2662_v31 = vld [vmem:[#allocation8 + $0x304] ss:$16 sps:$4 sm:$0xff]  }
  0x8f   :  { %727 = vmatpush2.bf16.msra.mxu1 %v2552_v32  ;;  %v2660_v32 = vld [vmem:[#allocation8 + $0x300] ss:$16 sps:$4 sm:$0xff]  }
  0x90   :  { %2219 = vmatmul.mubr.msk.bf16.vlgmr.msra.gmra.mxu0 %vm593_vm1, %v2983_v24  ;;  %1627 = vmatprep.subr.bf16.mxu1 %v2575_v40  ;;  %v2579_v24 = vld [vmem:[#allocation8 + $0x2c0] ss:$16 sps:$4 sm:$0xff]  }
  0x91   :  { %1585 = vmatpush1.bf16.msra.mxu0 %v2558_v33  ;;  %v2671_v33 = vld [vmem:[#allocation8 + $0x2ec] ss:$16 sps:$4 sm:$0xff]  }
  0x92   :  { %729 = vmatmul.mubr.bf16.vlgmr.msra.gmra.mxu1 %v100_v16  ;;  %1586 = vmatprep.subr.bf16.mxu0 %v2563_v0  ;;  %v2630_v16 = vld [vmem:[#allocation8 + $0x120] ss:$16 sps:$4 sm:$0xff]   ;;  %v183_v0 = vlaneseq }
  0x93   :  { %1628 = vmatpush1.bf16.msra.mxu1 %v2573_v39 }
  0x94   :  { %1629 = vmatprep.subr.bf16.mxu1 %v2581_v42 }
  0x95   :  { %1587 = vmatpush1.bf16.msra.mxu0 %v2561_v34  ;;  %v2992_v34 = vshrl.u32 %v183_v0, 7  ;;  %v2669_v0 = vld [vmem:[#allocation8 + $0x2e8] ss:$16 sps:$4 sm:$0xff]  }
  0x96   :  { %1588 = vmatprep.subr.bf16.mxu0 %v2566_v35 }
  0x97   :  { %1630 = vmatpush1.bf16.msra.mxu1 %v2579_v24  ;;  %v189_v35 = vsub.s32 1, %v2992_v34 }
  0x98   :  { %1631 = vmatprep.subr.bf16.mxu1 %v2587_v44 }
  0x99   :  { %1589 = vmatpush1.bf16.msra.mxu0 %v2564_v36 }
  0x9a   :  { %1590 = vmatprep.subr.bf16.mxu0 %v2569_v37  ;;  %v185_v37 = vsub.s32 0, %v2992_v34 }
  0x9b   :  { %1632 = vmatpush1.bf16.msra.mxu1 %v2585_v46 }
  0x9c   :  { %1633 = vmatprep.subr.bf16.mxu1 %v2593_v48 }
  0x9d   :  { %1591 = vmatpush1.bf16.msra.mxu0 %v2567_v38  ;;  %v181_v38 = vld [vmem:[#allocation7] sm:$0xf] }
  0x9e   :  { %1592 = vmatprep.subr.bf16.mxu0 %v2572_v41  ;;  %v190_v39 = vrot.slane %v181_v38, %v189_v35  ;;  %v186_v41 = vrot.slane %v181_v38, %v185_v37 }
  0x9f   :  { %1634 = vmatpush1.bf16.msra.mxu1 %v2591_v52 }
  0xa0   :  { %1635 = vmatprep.subr.bf16.mxu1 %v2599_v53 }
  0xa1   :  { %1593 = vmatpush1.bf16.msra.mxu0 %v2570_v43 }
  0xa2   :  { %1594 = vmatprep.subr.bf16.mxu0 %v2578_v45 }
  0xa3   :  { %1636 = vmatpush1.bf16.msra.mxu1 %v2597_v54 }
  0xa4   :  { %1637 = vmatprep.subr.bf16.mxu1 %v2605_v56 }
  0xa5   :  { %1595 = vmatpush1.bf16.msra.mxu0 %v2576_v47 }
  0xa6   :  { %1596 = vmatprep.subr.bf16.mxu0 %v2584_v49 }
  0xa7   :  { %1638 = vmatpush1.bf16.msra.mxu1 %v2603_v58 }
  0xa8   :  { %1639 = vmatprep.subr.bf16.mxu1 %v2611_v60  ;;  %v2645_v60 = vld [vmem:[#allocation8 + $0xe8] ss:$16 sps:$4 sm:$0xff]  }
  0xa9   :  { %1597 = vmatpush1.bf16.msra.mxu0 %v2582_v50 }
  0xaa   :  { %1598 = vmatprep.subr.bf16.mxu0 %v2590_v51 }
  0xab   :  { %1640 = vmatpush1.bf16.msra.mxu1 %v2609_v62 }
  0xac   :  { %1641 = vmatprep.subr.bf16.mxu1 %v2617_v1  ;;  %v2653_v1 = vld [vmem:[#allocation8 + $0xcc] ss:$16 sps:$4 sm:$0xff]  }
  0xad   :  { %1599 = vmatpush1.bf16.msra.mxu0 %v2588_v55 }
  0xae   :  { %1600 = vmatprep.subr.bf16.mxu0 %v2596_v57 }
  0xaf   :  { %1642 = vmatpush1.bf16.msra.mxu1 %v2615_v3 }
  0xb0   :  { %1643 = vmatprep.subr.bf16.mxu1 %v2623_v5 }
  0xb1   :  { %1601 = vmatpush2.bf16.msra.mxu0 %v2594_v59 }
  0xb2   :  { %1602 = vmatprep.subr.bf16.mxu0 %v2602_v61  ;;  %v197_v61 = vsub.s32 3, %v2992_v34 }
  0xb3   :  { %1644 = vmatpush2.bf16.msra.mxu1 %v2621_v7 }
  0xb4   :  { %1645 = vmatprep.subr.bf16.mxu1 %v2629_v13  ;;  %v198_v3 = vrot.slane %v181_v38, %v197_v61 }
  0xb5   :  { %1603 = vmatpush2.bf16.msra.mxu0 %v2600_v63  ;;  %v193_v63 = vsub.s32 2, %v2992_v34 }
  0xb6   :  { %1604 = vmatprep.subr.bf16.mxu0 %v2608_v2 }
  0xb7   :  { %1646 = vmatpush2.bf16.msra.mxu1 %v2627_v14  ;;  %v194_v5 = vrot.slane %v181_v38, %v193_v63  ;;  %v2677_v38 = vld [vmem:[#allocation8 + $0x2cc] ss:$16 sps:$4 sm:$0xff]  }
  0xb8   :  { %1647 = vmatprep.subr.bf16.mxu1 %v2635_v17 }
  0xb9   :  { %1605 = vmatpush2.bf16.msra.mxu0 %v2606_v4  ;;  %v2651_v4 = vld [vmem:[#allocation8 + $0xc8] ss:$16 sps:$4 sm:$0xff]  }
  0xba   :  { %1606 = vmatprep.subr.bf16.mxu0 %v2614_v6 }
  0xbb   :  { %1648 = vmatpush2.bf16.msra.mxu1 %v2633_v18 }
  0xbc   :  { %1649 = vmatprep.subr.bf16.mxu1 %v2641_v22 }
  0xbd   :  { %1607 = vmatpush2.bf16.msra.mxu0 %v2612_v8  ;;  %v2659_v8 = vld [vmem:[#allocation8 + $0xac] ss:$16 sps:$4 sm:$0xff]  }
  0xbe   :  { %1608 = vmatprep.subr.bf16.mxu0 %v2620_v9 }
  0xbf   :  { %1650 = vmatpush2.bf16.msra.mxu1 %v2639_v21  ;;  %v2663_v21 = vld [vmem:[#allocation8 + $0x88] ss:$16 sps:$4 sm:$0xff]  }
  0xc0   :  { %1651 = vmatprep.subr.bf16.mxu1 %v2644_v26 }
  0xc1   :  { %1609 = vmatpush2.bf16.msra.mxu0 %v2618_v10 }
  0xc2   :  { %1610 = vmatprep.subr.bf16.mxu0 %v2626_v11  ;;  %v2657_v11 = vld [vmem:[#allocation8 + $0xa8] ss:$16 sps:$4 sm:$0xff]  }
  0xc3   :  { %1652 = vmatpush2.bf16.msra.mxu1 %v2642_v25  ;;  %v2668_v25 = vld [vmem:[#allocation8 + $0x6c] ss:$16 sps:$4 sm:$0xff]  }
  0xc4   :  { %1653 = vmatprep.subr.bf16.mxu1 %v2650_v27 }
  0xc5   :  { %1611 = vmatpush2.bf16.msra.mxu0 %v2624_v12 }
  0xc6   :  { %1612 = vmatprep.subr.bf16.mxu0 %v2632_v15  ;;  %v2665_v15 = vld [vmem:[#allocation8 + $0x8c] ss:$16 sps:$4 sm:$0xff]  }
  0xc7   :  { %1654 = vmatpush2.bf16.msra.mxu1 %v2648_v28 }
  0xc8   :  { %1655 = vmatprep.subr.bf16.mxu1 %v2656_v29 }
  0xc9   :  { %1613 = vmatpush2.bf16.msra.mxu0 %v2630_v16 }
  0xca   :  { %1614 = vmatprep.subr.bf16.mxu0 %v2638_v19 }
  0xcb   :  { %1656 = vmatpush2.bf16.msra.mxu1 %v2654_v30  ;;  %v2666_v30 = vld [vmem:[#allocation8 + $0x68] ss:$16 sps:$4 sm:$0xff]  }
  0xcc   :  { %1657 = vmatprep.subr.bf16.mxu1 %v2662_v31 }
  0xcd   :  { %1615 = vmatpush2.bf16.msra.mxu0 %v2636_v20 }
  0xce   :  { %1670 = vmatprep.subr.bf16.mxu0 %v2647_v23 }
  0xcf   :  { %1658 = vmatpush2.bf16.msra.mxu1 %v2660_v32  ;;  %v2674_v32 = vld [vmem:[#allocation8 + $0x4c] ss:$16 sps:$4 sm:$0xff]  }
  0xd0   :  { %1713 = vmatprep.subr.bf16.mxu1 %v2671_v33 }
 0x112   :  { %v687_v36 = vpop.f32.mrf.mxu1 }
 0x114   :  { %v689_v40 = vpop.f32.mrf.mxu1 }
 0x116   :  { %v691_v44 = vpop.f32.mrf.mxu1 }
 0x118   :  { %v693_v52 = vpop.f32.mrf.mxu1 }
 0x140   :  { %v644_v42 = vpop.f32.mrf.mxu0 }
 0x141   :  { %v645_v45 = vadd.f32 %v644_v42, %v186_v41  ;;  %v2683_v42 = vld [vmem:[#allocation8 + $0x2ac] ss:$16 sps:$4 sm:$0xff]  }
 0x142   :  { %v646_v24 = vpop.f32.mrf.mxu0 }
 0x143   :  { %v647_v43 = vadd.f32 %v646_v24, %v190_v39  ;;  %v688_v53 = vadd.f32 %v687_v36, %v645_v45  ;;  %v2678_v24 = vld [vmem:[#allocation8 + $0x28] ss:$16 sps:$4 sm:$0xff]   ;;  %v2689_v45 = vld [vmem:[#allocation8 + $0x28c] ss:$16 sps:$4 sm:$0xff]  }
 0x144   :  { %v648_v46 = vpop.f32.mrf.mxu0 }
 0x145   :  { %v649_v47 = vadd.f32 %v648_v46, %v186_v41  ;;  %v690_v49 = vadd.f32 %v689_v40, %v647_v43  ;;  %v782_v58 = vmax.f32 %v688_v53, 0.0  ;;  %v2680_v40 = vld [vmem:[#allocation8 + $0x2c] ss:$16 sps:$4 sm:$0xff]   ;;  %v2675_v41 = vld [vmem:[#allocation8 + $0x2c8] ss:$16 sps:$4 sm:$0xff]  }
 0x146   :  { %v650_v48 = vpop.f32.mrf.mxu0  ;;  %v2686_v43 = vld [vmem:[#allocation8 + $0xc] ss:$16 sps:$4 sm:$0xff]   ;;  %v2684_v46 = vld [vmem:[#allocation8 + $0x8] ss:$16 sps:$4 sm:$0xff]  }
 0x147   :  { %v692_v50 = vadd.f32 %v691_v44, %v649_v47  ;;  %v651_v51 = vadd.f32 %v650_v48, %v190_v39  ;;  %v783_v56 = vmax.f32 %v690_v49, 0.0  ;;  %v2672_v39 = vld [vmem:[#allocation8 + $0x48] ss:$16 sps:$4 sm:$0xff]   ;;  %v2692_v47 = vld [vmem:[#allocation8 + $0x1ec] ss:$16 sps:$4 sm:$0xff]  }
 0x148   :  { %v2681_v44 = vld [vmem:[#allocation8 + $0x2a8] ss:$16 sps:$4 sm:$0xff]   ;;  %v2695_v49 = vld [vmem:[#allocation8 + $0x26c] ss:$16 sps:$4 sm:$0xff]  }
 0x149   :  { %v694_v54 = vadd.f32 %v693_v52, %v651_v51  ;;  %v786_v55 = vmax.f32 %v692_v50, 0.0  ;;  %v2687_v48 = vld [vmem:[#allocation8 + $0x288] ss:$16 sps:$4 sm:$0xff]   ;;  %v2698_v51 = vld [vmem:[#allocation8 + $0x1cc] ss:$16 sps:$4 sm:$0xff]  }
 0x14a   :  { %v2690_v50 = vld [vmem:[#allocation8 + $0x1e8] ss:$16 sps:$4 sm:$0xff]   ;;  %v2701_v53 = vld [vmem:[#allocation8 + $0x24c] ss:$16 sps:$4 sm:$0xff]  }
 0x14b   :  { %v787_v57 = vmax.f32 %v694_v54, 0.0  ;;  %v3001_v62 = vpack.c.bf16 %v786_v55, %v782_v58  ;;  %v2693_v52 = vld [vmem:[#allocation8 + $0x268] ss:$16 sps:$4 sm:$0xff]   ;;  %v2704_v55 = vld [vmem:[#allocation8 + $0x1ac] ss:$16 sps:$4 sm:$0xff]  }
 0x14c   :  { %v2696_v54 = vld [vmem:[#allocation8 + $0x1c8] ss:$16 sps:$4 sm:$0xff]  }
 0x14d   :  { %v791_v59 = vpack.c.bf16 %v787_v57, %v783_v56  ;;  %v2699_v56 = vld [vmem:[#allocation8 + $0x248] ss:$16 sps:$4 sm:$0xff]   ;;  %v2707_v57 = vld [vmem:[#allocation8 + $0x22c] ss:$16 sps:$4 sm:$0xff]  }
 0x14e   :  { %v2702_v58 = vld [vmem:[#allocation8 + $0x1a8] ss:$16 sps:$4 sm:$0xff]  }
 0x14f   :  { %1616 = vmatprep.mubr.bf16.mxu0 %v791_v59 }
 0x150   :  { %v773_v2 = vpop.f32.mrf.mxu0  ;;  %1617 = vmatmul.mubr.bf16.vlgmr.msra.gmra.mxu0 %v3001_v62 }
 0x151   :  { %1671 = vmatpush1.bf16.msra.mxu0 %v2645_v60  ;;  %1702 = vmatprep.mubr.bf16.mxu0 %v791_v59  ;;  %v2710_v59 = vld [vmem:[#allocation8 + $0x18c] ss:$16 sps:$4 sm:$0xff]   ;;  %v2705_v60 = vld [vmem:[#allocation8 + $0x228] ss:$16 sps:$4 sm:$0xff]  }
 0x152   :  { %v730_v6 = vpop.f32.mrf.mxu1  ;;  %v775_v7 = vpop.f32.mrf.mxu0  ;;  %1672 = vmatprep.subr.bf16.mxu0 %v2653_v1  ;;  %v2713_v1 = vld [vmem:[#allocation8 + $0x20c] ss:$16 sps:$4 sm:$0xff]  }
 0x153   :  { %v731_v12 = vadd.f32 %v730_v6, %v194_v5  ;;  %v2714_v6 = vld [vmem:[#allocation8 + $0x168] ss:$16 sps:$4 sm:$0xff]  }
 0x154   :  { %v732_v9 = vpop.f32.mrf.mxu1  ;;  %v777_v14 = vpop.f32.mrf.mxu0 }
 0x155   :  { %v733_v10 = vadd.f32 %v732_v9, %v198_v3  ;;  %1673 = vmatpush1.bf16.msra.mxu0 %v2651_v4  ;;  %v774_v22 = vadd.f32 %v773_v2, %v731_v12  ;;  %v2708_v2 = vld [vmem:[#allocation8 + $0x188] ss:$16 sps:$4 sm:$0xff]   ;;  %v2725_v9 = vld [vmem:[#allocation8 + $0x3cc] ss:$16 sps:$4 sm:$0xff]  }
 0x156   :  { %v734_v13 = vpop.f32.mrf.mxu1  ;;  %1674 = vmatprep.subr.bf16.mxu0 %v2659_v8  ;;  %v779_v23 = vpop.f32.mrf.mxu0  ;;  %v2711_v4 = vld [vmem:[#allocation8 + $0x208] ss:$16 sps:$4 sm:$0xff]  }
 0x157   :  { %v735_v16 = vadd.f32 %v734_v13, %v194_v5  ;;  %v776_v18 = vadd.f32 %v775_v7, %v733_v10  ;;  %v784_v31 = vmax.f32 %v774_v22, 0.0  ;;  %v2719_v5 = vld [vmem:[#allocation8 + $0x3ec] ss:$16 sps:$4 sm:$0xff]   ;;  %v2717_v8 = vld [vmem:[#allocation8 + $0x3e8] ss:$16 sps:$4 sm:$0xff]  }
 0x158   :  { %v736_v17 = vpop.f32.mrf.mxu1  ;;  %v2722_v7 = vld [vmem:[#allocation8 + $0x14c] ss:$16 sps:$4 sm:$0xff]   ;;  %v2720_v10 = vld [vmem:[#allocation8 + $0x148] ss:$16 sps:$4 sm:$0xff]  }
 0x159   :  { %v778_v19 = vadd.f32 %v777_v14, %v735_v16  ;;  %v737_v20 = vadd.f32 %v736_v17, %v198_v3  ;;  %1675 = vmatpush1.bf16.msra.mxu0 %v2657_v11  ;;  %v785_v28 = vmax.f32 %v776_v18, 0.0  ;;  %v2716_v3 = vld [vmem:[#allocation8 + $0x16c] ss:$16 sps:$4 sm:$0xff]   ;;  %v2723_v12 = vld [vmem:[#allocation8 + $0x3c8] ss:$16 sps:$4 sm:$0xff]  }
 0x15a   :  { %1676 = vmatprep.subr.bf16.mxu0 %v2665_v15  ;;  %v2728_v11 = vld [vmem:[#allocation8 + $0x12c] ss:$16 sps:$4 sm:$0xff]   ;;  %v2726_v14 = vld [vmem:[#allocation8 + $0x128] ss:$16 sps:$4 sm:$0xff]  }
 0x15b   :  { %v780_v26 = vadd.f32 %v779_v23, %v737_v20  ;;  %v788_v27 = vmax.f32 %v778_v19, 0.0  ;;  %v2731_v13 = vld [vmem:[#allocation8 + $0x3ac] ss:$16 sps:$4 sm:$0xff]   ;;  %v2729_v16 = vld [vmem:[#allocation8 + $0x3a8] ss:$16 sps:$4 sm:$0xff]  }
 0x15c   :  { %v2734_v15 = vld [vmem:[#allocation8 + $0x10c] ss:$16 sps:$4 sm:$0xff]   ;;  %v2732_v18 = vld [vmem:[#allocation8 + $0x108] ss:$16 sps:$4 sm:$0xff]  }
 0x15d   :  { %v789_v29 = vmax.f32 %v780_v26, 0.0  ;;  %1677 = vmatpush1.bf16.msra.mxu0 %v2663_v21  ;;  %v3009_v36 = vpack.c.bf16 %v788_v27, %v784_v31  ;;  %v2737_v17 = vld [vmem:[#allocation8 + $0x38c] ss:$16 sps:$4 sm:$0xff]   ;;  %v2735_v20 = vld [vmem:[#allocation8 + $0x388] ss:$16 sps:$4 sm:$0xff]   ;;  %v2752_v27 = vld [vmem:[#allocation10 + $0x70] sm:$0xff]  }
 0x15e   :  { %1678 = vmatprep.subr.bf16.mxu0 %v2668_v25  ;;  %v2750_v19 = vld [vmem:[#allocation10 + $0x78] sm:$0xff]   ;;  %v2754_v31 = vld [vmem:[#allocation10 + $0x68] sm:$0xff]  }
 0x15f   :  { %v793_v33 = vpack.c.bf16 %v789_v29, %v785_v28  ;;  %v2740_v21 = vld [vmem:[#allocation8 + $0x36c] ss:$16 sps:$4 sm:$0xff]   ;;  %v2738_v23 = vld [vmem:[#allocation8 + $0x368] ss:$16 sps:$4 sm:$0xff]   ;;  %v2753_v28 = vld [vmem:[#allocation10 + $0x30] sm:$0xff]  }
 0x160   :  { %v2751_v22 = vld [vmem:[#allocation10 + $0x38] sm:$0xff]  }
 0x161   :  { %1659 = vmatprep.mubr.bf16.mxu1 %v793_v33  ;;  %1679 = vmatpush1.bf16.msra.mxu0 %v2666_v30  ;;  %v2743_v25 = vld [vmem:[#allocation8 + $0x34c] ss:$16 sps:$4 sm:$0xff]   ;;  %v2741_v26 = vld [vmem:[#allocation8 + $0x348] ss:$16 sps:$4 sm:$0xff]  }
 0x162   :  { %1660 = vmatmul.mubr.bf16.vlgmr.msra.gmra.mxu1 %v3009_v36  ;;  %1680 = vmatprep.subr.bf16.mxu0 %v2674_v32  ;;  %v2746_v29 = vld [vmem:[#allocation8 + $0x32c] ss:$16 sps:$4 sm:$0xff]   ;;  %v2744_v30 = vld [vmem:[#allocation8 + $0x328] ss:$16 sps:$4 sm:$0xff]  }
 0x163   :  { %1714 = vmatpush1.bf16.msra.mxu1 %v2669_v0  ;;  %1745 = vmatprep.mubr.bf16.mxu1 %v793_v33  ;;  %v2755_v32 = vld [vmem:[#allocation10 + $0x28] sm:$0xff]   ;;  %v2756_v33 = vld [vmem:[#allocation10 + $0x60] sm:$0xff]  }
 0x164   :  { %1715 = vmatprep.subr.bf16.mxu1 %v2677_v38  ;;  %v2749_v0 = vld [vmem:[#allocation8 + $0x30c] ss:$16 sps:$4 sm:$0xff]   ;;  %v2747_v38 = vld [vmem:[#allocation8 + $0x308] ss:$16 sps:$4 sm:$0xff]  }
 0x165   :  { %1681 = vmatpush1.bf16.msra.mxu0 %v2672_v39  ;;  %v2758_v39 = vld [vmem:[#allocation10 + $0x58] sm:$0xff]  }
 0x166   :  { %1682 = vmatprep.subr.bf16.mxu0 %v2680_v40  ;;  %v2759_v40 = vld [vmem:[#allocation10 + $0x18] sm:$0xff]  }
 0x167   :  { %1716 = vmatpush1.bf16.msra.mxu1 %v2675_v41  ;;  %v2760_v41 = vld [vmem:[#allocation10 + $0x50] sm:$0xff]  }
 0x168   :  { %1717 = vmatprep.subr.bf16.mxu1 %v2683_v42  ;;  %v2761_v42 = vld [vmem:[#allocation10 + $0x10] sm:$0xff]  }
 0x169   :  { %1683 = vmatpush1.bf16.msra.mxu0 %v2678_v24  ;;  %v2762_v24 = vld [vmem:[#allocation10 + $0x48] sm:$0xff]  }
 0x16a   :  { %1684 = vmatprep.subr.bf16.mxu0 %v2686_v43  ;;  %v2763_v43 = vld [vmem:[#allocation10 + $0x8] sm:$0xff]  }
 0x16b   :  { %1718 = vmatpush1.bf16.msra.mxu1 %v2681_v44  ;;  %v2764_v44 = vld [vmem:[#allocation10 + $0x40] sm:$0xff]  }
 0x16c   :  { %1719 = vmatprep.subr.bf16.mxu1 %v2689_v45  ;;  %v2765_v45 = vld [vmem:[#allocation10] sm:$0xff]  }
 0x16d   :  { %1685 = vmatpush1.bf16.msra.mxu0 %v2684_v46  ;;  %v2766_v46 = vld [vmem:[#allocation10 + $0xf8] sm:$0xff]  }
 0x16e   :  { %1686 = vmatprep.subr.bf16.mxu0 %v2692_v47  ;;  %v2767_v47 = vld [vmem:[#allocation10 + $0xb8] sm:$0xff]  }
 0x16f   :  { %1720 = vmatpush1.bf16.msra.mxu1 %v2687_v48  ;;  %v2768_v48 = vld [vmem:[#allocation10 + $0xf0] sm:$0xff]  }
 0x170   :  { %1721 = vmatprep.subr.bf16.mxu1 %v2695_v49  ;;  %v2769_v49 = vld [vmem:[#allocation10 + $0xb0] sm:$0xff]  }
 0x171   :  { %1687 = vmatpush2.bf16.msra.mxu0 %v2690_v50  ;;  %v2771_v50 = vld [vmem:[#allocation10 + $0xa8] sm:$0xff]  }
 0x172   :  { %1688 = vmatprep.subr.bf16.mxu0 %v2698_v51  ;;  %v2772_v51 = vld [vmem:[#allocation10 + $0xe0] sm:$0xff]  }
 0x173   :  { %1722 = vmatpush1.bf16.msra.mxu1 %v2693_v52  ;;  %v2773_v52 = vld [vmem:[#allocation10 + $0xa0] sm:$0xff]  }
 0x174   :  { %1723 = vmatprep.subr.bf16.mxu1 %v2701_v53  ;;  %v2774_v53 = vld [vmem:[#allocation10 + $0xd8] sm:$0xff]  }
 0x175   :  { %1689 = vmatpush2.bf16.msra.mxu0 %v2696_v54  ;;  %v2775_v54 = vld [vmem:[#allocation10 + $0x98] sm:$0xff]  }
 0x176   :  { %1690 = vmatprep.subr.bf16.mxu0 %v2704_v55  ;;  %v2776_v55 = vld [vmem:[#allocation10 + $0xd0] sm:$0xff]  }
 0x177   :  { %1724 = vmatpush1.bf16.msra.mxu1 %v2699_v56  ;;  %v2777_v56 = vld [vmem:[#allocation10 + $0x90] sm:$0xff]  }
 0x178   :  { %1725 = vmatprep.subr.bf16.mxu1 %v2707_v57  ;;  %v2778_v57 = vld [vmem:[#allocation10 + $0xc8] sm:$0xff]  }
 0x179   :  { %1691 = vmatpush2.bf16.msra.mxu0 %v2702_v58  ;;  %v2779_v58 = vld [vmem:[#allocation10 + $0x88] sm:$0xff]  }
 0x17a   :  { %1692 = vmatprep.subr.bf16.mxu0 %v2710_v59  ;;  %v2780_v59 = vld [vmem:[#allocation10 + $0xc0] sm:$0xff]  }
 0x17b   :  { %1726 = vmatpush1.bf16.msra.mxu1 %v2705_v60  ;;  %v2781_v60 = vld [vmem:[#allocation10 + $0x80] sm:$0xff]  }
 0x17c   :  { %1727 = vmatprep.subr.bf16.mxu1 %v2713_v1 }
 0x17d   :  { %1693 = vmatpush2.bf16.msra.mxu0 %v2708_v2 }
 0x17e   :  { %1694 = vmatprep.subr.bf16.mxu0 %v2716_v3  ;;  %v922_v3 = vld [vmem:[%s3035_s4] sm:$0xf] }
 0x17f   :  { %1728 = vmatpush1.bf16.msra.mxu1 %v2711_v4 }
 0x180   :  { %1729 = vmatprep.subr.bf16.mxu1 %v2719_v5  ;;  %v931_v5 = vrot.slane %v922_v3, %v189_v35 }
 0x181   :  { %1695 = vmatpush2.bf16.msra.mxu0 %v2714_v6  ;;  %v927_v6 = vrot.slane %v922_v3, %v185_v37 }
 0x182   :  { %1696 = vmatprep.subr.bf16.mxu0 %v2722_v7 }
 0x183   :  { %1730 = vmatpush2.bf16.msra.mxu1 %v2717_v8 }
 0x184   :  { %1731 = vmatprep.subr.bf16.mxu1 %v2725_v9 }
 0x185   :  { %1697 = vmatpush2.bf16.msra.mxu0 %v2720_v10 }
 0x186   :  { %1698 = vmatprep.subr.bf16.mxu0 %v2728_v11 }
 0x187   :  { %1732 = vmatpush2.bf16.msra.mxu1 %v2723_v12 }
 0x188   :  { %1733 = vmatprep.subr.bf16.mxu1 %v2731_v13 }
 0x189   :  { %1699 = vmatpush2.bf16.msra.mxu0 %v2726_v14 }
 0x18a   :  { %1700 = vmatprep.subr.bf16.mxu0 %v2734_v15 }
 0x18b   :  { %1734 = vmatpush2.bf16.msra.mxu1 %v2729_v16 }
 0x18c   :  { %1735 = vmatprep.subr.bf16.mxu1 %v2737_v17 }
 0x18d   :  { %1701 = vmatpush2.bf16.msra.mxu0 %v2732_v18 }
 0x18e   :  { %2381 = vmatprep.subr.bf16.mxu0 %v2750_v19 }
 0x18f   :  { %1736 = vmatpush2.bf16.msra.mxu1 %v2735_v20 }
 0x190   :  { %1703 = vmatmul.mubr.bf16.vlgmr.msra.gmra.mxu0 %v3001_v62  ;;  %1737 = vmatprep.subr.bf16.mxu1 %v2740_v21  ;;  %v2757_v62 = vld [vmem:[#allocation10 + $0x20] sm:$0xff]  }
 0x191   :  { %2382 = vmatpush3.bf16.msra.mxu0 %v2751_v22 }
 0x192   :  { %2383 = vmatprep.subr.bf16.mxu0 %v2752_v27 }
 0x193   :  { %1738 = vmatpush2.bf16.msra.mxu1 %v2738_v23 }
 0x194   :  { %1739 = vmatprep.subr.bf16.mxu1 %v2743_v25 }
 0x195   :  { %2384 = vmatpush3.bf16.msra.mxu0 %v2753_v28  ;;  %v939_v28 = vrot.slane %v922_v3, %v197_v61 }
 0x196   :  { %2385 = vmatprep.subr.bf16.mxu0 %v2754_v31 }
 0x197   :  { %1740 = vmatpush2.bf16.msra.mxu1 %v2741_v26 }
 0x198   :  { %1741 = vmatprep.subr.bf16.mxu1 %v2746_v29  ;;  %v935_v29 = vrot.slane %v922_v3, %v193_v63 }
 0x199   :  { %2386 = vmatpush3.bf16.msra.mxu0 %v2755_v32 }
 0x19a   :  { %2387 = vmatprep.subr.bf16.mxu0 %v2756_v33 }
 0x19b   :  { %1742 = vmatpush2.bf16.msra.mxu1 %v2744_v30 }
 0x19c   :  { %1743 = vmatprep.subr.bf16.mxu1 %v2749_v0 }
 0x19d   :  { %2388 = vmatpush3.bf16.msra.mxu0 %v2757_v62 }
 0x19e   :  { %2389 = vmatprep.subr.bf16.mxu0 %v2758_v39 }
 0x19f   :  { %1744 = vmatpush2.bf16.msra.mxu1 %v2747_v38 }
 0x1a0   :  { %2403 = vmatprep.subr.bf16.mxu1 %v2766_v46 }
 0x1a1   :  { %2390 = vmatpush3.bf16.msra.mxu0 %v2759_v40 }
 0x1a2   :  { %1746 = vmatmul.mubr.bf16.vlgmr.msra.gmra.mxu1 %v3009_v36  ;;  %2391 = vmatprep.subr.bf16.mxu0 %v2760_v41  ;;  %v2770_v36 = vld [vmem:[#allocation10 + $0xe8] sm:$0xff]  }
 0x1a3   :  { %2404 = vmatpush3.bf16.msra.mxu1 %v2767_v47 }
 0x1a4   :  { %2405 = vmatprep.subr.bf16.mxu1 %v2768_v48 }
 0x1a5   :  { %2392 = vmatpush3.bf16.msra.mxu0 %v2761_v42 }
 0x1a6   :  { %2393 = vmatprep.subr.bf16.mxu0 %v2762_v24 }
 0x1a7   :  { %2406 = vmatpush3.bf16.msra.mxu1 %v2769_v49 }
 0x1a8   :  { %2407 = vmatprep.subr.bf16.mxu1 %v2770_v36 }
 0x1a9   :  { %2394 = vmatpush3.bf16.msra.mxu0 %v2763_v43 }
 0x1aa   :  { %2395 = vmatprep.subr.bf16.mxu0 %v2764_v44 }
 0x1ab   :  { %2408 = vmatpush3.bf16.msra.mxu1 %v2771_v50  ;;  %v2348_v50 = vld [vmem:[%s3037_s6] ss:$0 sm:$0xff]  ;;  %s2882_s6 = scalar_lea.vmem %s2123_s8, 256 }
 0x1ac   :  { %2409 = vmatprep.subr.bf16.mxu1 %v2772_v51  ;;  %p2883_p11 = scmp.ne.s32.totalorder %s2123_s8, %s2882_s6  ;;  %p2888_p13 = scmp.lt.s32.totalorder %s2882_s6, %s2882_s6 }
 0x1ad   :  { %2396 = vmatpush3.bf16.msra.mxu0 %v2765_v45 }
 0x1ae   :  { %p2889_p0 = por %p2888_p13, %p2887_p12 }
 0x1af   :  { %2410 = vmatpush3.bf16.msra.mxu1 %v2773_v52 }
 0x1b0   :  { %2411 = vmatprep.subr.bf16.mxu1 %v2774_v53  ;;  %p2890_p1 = pnand %p2889_p0, %p2883_p11 }
 0x1b3   :  { %2412 = vmatpush3.bf16.msra.mxu1 %v2775_v54 }
 0x1b4   :  { %2413 = vmatprep.subr.bf16.mxu1 %v2776_v55 }
 0x1b7   :  { %2414 = vmatpush3.bf16.msra.mxu1 %v2777_v56 }
 0x1b8   :  { %2415 = vmatprep.subr.bf16.mxu1 %v2778_v57 }
 0x1bb   :  { %2416 = vmatpush3.bf16.msra.mxu1 %v2779_v58 }
 0x1bc   :  { %2417 = vmatprep.subr.bf16.mxu1 %v2780_v59 }
 0x1bf   :  { %2418 = vmatpush3.bf16.msra.mxu1 %v2781_v60 }
 0x210   :  { %v1618_v1 = vpop.f32.mrf.mxu0 }
 0x211   :  { %v1619_v12 = vadd.f32 %v1618_v1, %v927_v6 }
 0x212   :  { %v1620_v2 = vpop.f32.mrf.mxu0 }
 0x213   :  { %v1621_v10 = vadd.f32 %v1620_v2, %v931_v5 }
 0x214   :  { %v1622_v4 = vpop.f32.mrf.mxu0 }
 0x215   :  { %v1623_v11 = vadd.f32 %v1622_v4, %v927_v6 }
 0x216   :  { %v1624_v8 = vpop.f32.mrf.mxu0 }
 0x217   :  { %v1625_v14 = vadd.f32 %v1624_v8, %v931_v5 }
 0x222   :  { %v1661_v7 = vpop.f32.mrf.mxu1 }
 0x223   :  { %v1662_v17 = vadd.f32 %v1661_v7, %v1619_v12 }
 0x224   :  { %v1663_v9 = vpop.f32.mrf.mxu1 }
 0x225   :  { %v1664_v15 = vadd.f32 %v1663_v9, %v1621_v10  ;;  %v1756_v35 = vmax.f32 %v1662_v17, 0.0 }
 0x226   :  { %v1665_v13 = vpop.f32.mrf.mxu1 }
 0x227   :  { %v1666_v16 = vadd.f32 %v1665_v13, %v1623_v11  ;;  %v1757_v21 = vmax.f32 %v1664_v15, 0.0 }
 0x228   :  { %v1667_v18 = vpop.f32.mrf.mxu1 }
 0x229   :  { %v1668_v19 = vadd.f32 %v1667_v18, %v1625_v14  ;;  %v1760_v20 = vmax.f32 %v1666_v16, 0.0 }
 0x22b   :  { %v1761_v22 = vmax.f32 %v1668_v19, 0.0  ;;  %v1764_v25 = vpack.c.bf16 %v1760_v20, %v1756_v35 }
 0x22d   :  { %v1765_v23 = vpack.c.bf16 %v1761_v22, %v1757_v21 }
 0x22f   :  { %2063 = vmatprep.mubr.bf16.mxu0 %v1765_v23 }
 0x230   :  { %2064 = vmatmul.mubr.bf16.vlgmr.msra.gmra.mxu0 %v1764_v25 }
 0x250   :  { %v1704_v37 = vpop.f32.mrf.mxu0 }
 0x251   :  { %v1705_v62 = vadd.f32 %v1704_v37, %v935_v29 }
 0x252   :  { %v1706_v26 = vpop.f32.mrf.mxu0 }
 0x253   :  { %v1707_v33 = vadd.f32 %v1706_v26, %v939_v28 }
 0x254   :  { %v1708_v27 = vpop.f32.mrf.mxu0 }
 0x255   :  { %v1709_v0 = vadd.f32 %v1708_v27, %v935_v29 }
 0x256   :  { %v1710_v31 = vpop.f32.mrf.mxu0 }
 0x257   :  { %v1711_v39 = vadd.f32 %v1710_v31, %v939_v28 }
 0x262   :  { %v1747_v30 = vpop.f32.mrf.mxu1 }
 0x263   :  { %v1748_v42 = vadd.f32 %v1747_v30, %v1705_v62 }
 0x264   :  { %v1749_v32 = vpop.f32.mrf.mxu1 }
 0x265   :  { %v1750_v40 = vadd.f32 %v1749_v32, %v1707_v33  ;;  %v1758_v61 = vmax.f32 %v1748_v42, 0.0 }
 0x266   :  { %v1751_v38 = vpop.f32.mrf.mxu1 }
 0x267   :  { %v1752_v41 = vadd.f32 %v1751_v38, %v1709_v0  ;;  %v1759_v45 = vmax.f32 %v1750_v40, 0.0 }
 0x268   :  { %v1753_v24 = vpop.f32.mrf.mxu1 }
 0x269   :  { %v1754_v43 = vadd.f32 %v1753_v24, %v1711_v39  ;;  %v1762_v44 = vmax.f32 %v1752_v41, 0.0 }
 0x26b   :  { %v1763_v46 = vmax.f32 %v1754_v43, 0.0  ;;  %v1766_v34 = vpack.c.bf16 %v1762_v44, %v1758_v61 }
 0x26d   :  { %v1767_v47 = vpack.c.bf16 %v1763_v46, %v1759_v45 }
 0x26f   :  { %2104 = vmatprep.mubr.bf16.mxu1 %v1767_v47 }
 0x270   :  { %2105 = vmatmul.mubr.bf16.vlgmr.msra.gmra.mxu1 %v1766_v34 }
 0x2f0   :  { %v2397_v63 = vpop.f32.mrf.mxu0 }
 0x2f2   :  { %v2398_v48 = vpop.f32.mrf.mxu0 }
 0x2f3   :  { %v2399_v36 = vadd.f32 %v2398_v48, %v2397_v63 }
 0x2f4   :  { %v2400_v49 = vpop.f32.mrf.mxu0 }
 0x2f5   :  { %v2066_v54 = vadd.f32 %v2399_v36, %v2348_v50 }
 0x2f6   :  { %v2401_v51 = vpop.f32.mrf.mxu0 }
 0x2f7   :  { %v2402_v55 = vadd.f32 %v2401_v51, %v2400_v49 }
 0x2f9   :  { %v2069_v60 = vadd.f32 %v2402_v55, %v2348_v50 }
 0x330   :  { %v2419_v52 = vpop.f32.mrf.mxu1 }
 0x332   :  { %v2420_v53 = vpop.f32.mrf.mxu1 }
 0x333   :  { %v2421_v56 = vadd.f32 %v2420_v53, %v2419_v52 }
 0x334   :  { %v2422_v57 = vpop.f32.mrf.mxu1 }
 0x335   :  { %v2107_v58 = vadd.f32 %v2421_v56, %v2066_v54 }
 0x336   :  { %v2423_v59 = vpop.f32.mrf.mxu1 }
 0x337   :  { %v2113_v1 = vmax.f32 %v2107_v58, 0.0  ;;  %v2424_v2 = vadd.f32 %v2423_v59, %v2422_v57 }
 0x339   :  { %2115 = vst [vmem:[#allocation11] sm:$0xff] %v2113_v1  ;;  %v2110_v3 = vadd.f32 %v2424_v2, %v2069_v60 }
 0x33b   :  { %v2114_v4 = vmax.f32 %v2110_v3, 0.0 }
 0x33d   :  { %2116 = vst [vmem:[#allocation11 + $0x8] sm:$0xff] %v2114_v4 }
 0x33e   :  { %2893 = shalt.err (!%p2890_p1)
}
 0x33f   :  { %s2923_s9 = smov 128   ;;  %s2924_s10 = smov 8  }
 0x340   :  { %2128 = dma.vmem_to_hbm [thread:$0]  %s2123_s8, 256, %s3038_s7, [#allocation4], %s2923_s9, %s2923_s9, %s2924_s10  }
 0x341   :  { %2908 = dma.done.wait [#allocation4], 256  }
 0x342   :  { %2909 = vsyncadd [#allocation4], 4294967040 }
 0x343   :  { %2132 = vsyncpa [#allocation3], 1 }
 0x344   :  { %2133 = vsyncpa [#allocation6], 1 }
 0x345   :  { %2134 = vsyncpa [#allocation9], 1 }
 0x346   :  { %2135 = vsyncpa [#allocation4], 1 }

</bundles_post_ra>
